<compile_context>
chip_gen: v5e
topology: v5e:2x2
jax: 0.10.0
libtpu: 0.0.40
codegen_flags: <defaults>
</compile_context>

<pallas_src>
import jax
import jax.numpy as jnp
from jax.experimental import pallas as pl
from jax.experimental.pallas import tpu as pltpu

HIDDEN = 128      # per-branch hidden width (torch nn.Linear(s_dim, 128))
OUT_PAD = 128     # lane-dense packed output width: [logits | value | zeros]


def a3c_forward_kernel(x_ref, w1_ref, b1_ref, w2_ref, b2_ref, out_ref):
    x = x_ref[...]                       # (B, s_dim)        f32
    w1 = w1_ref[...]                     # (s_dim, 2*HIDDEN) f32
    B = x.shape[0]
    s_dim = x.shape[1]
    fused = w1.shape[1]

    if s_dim <= 16:
        # Tiny contraction dim: first layer on the VPU as broadcast FMAs,
        # bias as accumulator init.  Avoids an MXU round trip that would use
        # <4% of the systolic array depth.
        h = jnp.broadcast_to(b1_ref[...], (B, fused))
        for k in range(s_dim):           # static unroll (s_dim is a constant)
            h = h + x[:, k:k + 1] * w1[k:k + 1, :]
    else:
        h = jnp.dot(x, w1, preferred_element_type=jnp.float32) + b1_ref[...]

    h = jnp.tanh(h)                      # fused hidden: [tanh(pi1) | tanh(v1)]

    # Single MXU dot against the block-diagonal packed second-layer weight
    # yields [logits | value | zero padding] in one lane-dense (B, 128) tile.
    out = jnp.dot(h, w2_ref[...], preferred_element_type=jnp.float32) + b2_ref[...]
    out_ref[...] = out.astype(out_ref.dtype)


def pack_params(p, a_dim):
    """Packs per-branch Linear params into the fused kernel layout.

    Pure layout plumbing done once outside the kernel (cache the result)."""
    w1 = jnp.concatenate([p["w_pi1"], p["w_v1"]], axis=1)       # (s_dim, 2H)
    b1 = jnp.concatenate([p["b_pi1"], p["b_v1"]], axis=1)       # (1, 2H)

    w2 = jnp.zeros((2 * HIDDEN, OUT_PAD), jnp.float32)
    w2 = w2.at[:HIDDEN, :a_dim].set(p["w_pi2"])                 # policy block
    w2 = w2.at[HIDDEN:, a_dim:a_dim + 1].set(p["w_v2"])         # value block
    b2 = jnp.zeros((1, OUT_PAD), jnp.float32)
    b2 = b2.at[:, :a_dim].set(p["b_pi2"])
    b2 = b2.at[:, a_dim:a_dim + 1].set(p["b_v2"])
    return w1, b1, w2, b2


def a3c_forward(x, packed_params, a_dim):
    """Full fused forward pass in a single Pallas invocation.

    Returns (logits [B, a_dim], values [B, 1]) like the torch module."""
    w1, b1, w2, b2 = packed_params
    B = x.shape[0]
    vmem = pl.BlockSpec(memory_space=pltpu.MemorySpace.VMEM)  # whole array in VMEM

    out = pl.pallas_call(
        a3c_forward_kernel,
        out_shape=jax.ShapeDtypeStruct((B, OUT_PAD), jnp.float32),
        in_specs=[vmem, vmem, vmem, vmem, vmem],
        out_specs=vmem,
    )(x, w1, b1, w2, b2)

    logits = out[:, :a_dim]
    values = out[:, a_dim:a_dim + 1]
    return logits, values


def init_params(key, s_dim, a_dim, hidden=HIDDEN):
    """Deterministic synthetic init mirroring set_init: normal(0, 0.1) weights,
    zero biases.  Weights stored as [in, out] (torch Linear does x @ W.T + b;
    here y = x @ W + b — mathematically identical parameterization)."""
    k1, k2, k3, k4 = jax.random.split(key, 4)
    std = 0.1
    return {
        "w_pi1": jax.random.normal(k1, (s_dim, hidden), jnp.float32) * std,
        "b_pi1": jnp.zeros((1, hidden), jnp.float32),
        "w_pi2": jax.random.normal(k2, (hidden, a_dim), jnp.float32) * std,
        "b_pi2": jnp.zeros((1, a_dim), jnp.float32),
        "w_v1": jax.random.normal(k3, (s_dim, hidden), jnp.float32) * std,
        "b_v1": jnp.zeros((1, hidden), jnp.float32),
        "w_v2": jax.random.normal(k4, (hidden, 1), jnp.float32) * std,
        "b_v2": jnp.zeros((1, 1), jnp.float32),
    }


def reference_forward(x, p):
    pi1 = jnp.tanh(x @ p["w_pi1"] + p["b_pi1"])
    logits = pi1 @ p["w_pi2"] + p["b_pi2"]
    v1 = jnp.tanh(x @ p["w_v1"] + p["b_v1"])
    values = v1 @ p["w_v2"] + p["b_v2"]
    return logits, values


if __name__ == "__main__":
    key = jax.random.PRNGKey(0)
    k_param, k_x = jax.random.split(key)

    batch, s_dim, a_dim = 8, 4, 2  # small CartPole-like sizes
    params = init_params(k_param, s_dim, a_dim)
    packed = pack_params(params, a_dim)
    x = jax.random.normal(k_x, (batch, s_dim), jnp.float32)

    logits, values = a3c_forward(x, packed, a_dim)
    logits = jax.block_until_ready(logits)
    values = jax.block_until_ready(values)

    ref_logits, ref_values = reference_forward(x, params)
    assert logits.shape == (batch, a_dim)
    assert values.shape == (batch, 1)
    # Tolerance accounts for the kernel's VPU-exact first layer vs. XLA's
    # default TPU matmul precision in the reference (different rounding paths).
    assert jnp.allclose(logits, ref_logits, atol=2e-3, rtol=2e-3)
    assert jnp.allclose(values, ref_values, atol=2e-3, rtol=2e-3)

    print("KERNEL_OK")
</pallas_src>

<mosaic_0001>
module attributes {stable_mosaic.version = 11 : i64} {
  func.func @a3c_forward_kernel(%arg0: memref<8x4xf32, #tpu.memory_space<vmem>>, %arg1: memref<4x256xf32, #tpu.memory_space<vmem>>, %arg2: memref<1x256xf32, #tpu.memory_space<vmem>>, %arg3: memref<256x128xf32, #tpu.memory_space<vmem>>, %arg4: memref<1x128xf32, #tpu.memory_space<vmem>>, %arg5: memref<8x128xf32, #tpu.memory_space<vmem>>) attributes {dimension_semantics = [], scalar_prefetch = 0 : i64, scratch_operands = 0 : i64, tpu.core_type = #tpu.core_type<tc>} {
    %c0 = arith.constant 0 : index
    %c0_0 = arith.constant 0 : index
    %0 = vector.load %arg0[%c0, %c0_0] : memref<8x4xf32, #tpu.memory_space<vmem>>, vector<8x4xf32>
    %c0_1 = arith.constant 0 : index
    %c0_2 = arith.constant 0 : index
    %1 = vector.load %arg1[%c0_1, %c0_2] : memref<4x256xf32, #tpu.memory_space<vmem>>, vector<4x256xf32>
    %c0_3 = arith.constant 0 : index
    %c0_4 = arith.constant 0 : index
    %2 = vector.load %arg2[%c0_3, %c0_4] : memref<1x256xf32, #tpu.memory_space<vmem>>, vector<1x256xf32>
    %3 = vector.shape_cast %2 : vector<1x256xf32> to vector<1x256xf32>
    %4 = vector.broadcast %3 : vector<1x256xf32> to vector<8x256xf32>
    %5 = vector.extract_strided_slice %0 {offsets = [0, 0], sizes = [8, 1], strides = [1, 1]} : vector<8x4xf32> to vector<8x1xf32>
    %6 = vector.extract_strided_slice %1 {offsets = [0, 0], sizes = [1, 256], strides = [1, 1]} : vector<4x256xf32> to vector<1x256xf32>
    %7 = vector.broadcast %5 : vector<8x1xf32> to vector<8x256xf32>
    %8 = vector.broadcast %6 : vector<1x256xf32> to vector<8x256xf32>
    %9 = arith.mulf %7, %8 : vector<8x256xf32>
    %10 = arith.addf %4, %9 : vector<8x256xf32>
    %11 = vector.extract_strided_slice %0 {offsets = [0, 1], sizes = [8, 1], strides = [1, 1]} : vector<8x4xf32> to vector<8x1xf32>
    %12 = vector.extract_strided_slice %1 {offsets = [1, 0], sizes = [1, 256], strides = [1, 1]} : vector<4x256xf32> to vector<1x256xf32>
    %13 = vector.broadcast %11 : vector<8x1xf32> to vector<8x256xf32>
    %14 = vector.broadcast %12 : vector<1x256xf32> to vector<8x256xf32>
    %15 = arith.mulf %13, %14 : vector<8x256xf32>
    %16 = arith.addf %10, %15 : vector<8x256xf32>
    %17 = vector.extract_strided_slice %0 {offsets = [0, 2], sizes = [8, 1], strides = [1, 1]} : vector<8x4xf32> to vector<8x1xf32>
    %18 = vector.extract_strided_slice %1 {offsets = [2, 0], sizes = [1, 256], strides = [1, 1]} : vector<4x256xf32> to vector<1x256xf32>
    %19 = vector.broadcast %17 : vector<8x1xf32> to vector<8x256xf32>
    %20 = vector.broadcast %18 : vector<1x256xf32> to vector<8x256xf32>
    %21 = arith.mulf %19, %20 : vector<8x256xf32>
    %22 = arith.addf %16, %21 : vector<8x256xf32>
    %23 = vector.extract_strided_slice %0 {offsets = [0, 3], sizes = [8, 1], strides = [1, 1]} : vector<8x4xf32> to vector<8x1xf32>
    %24 = vector.extract_strided_slice %1 {offsets = [3, 0], sizes = [1, 256], strides = [1, 1]} : vector<4x256xf32> to vector<1x256xf32>
    %25 = vector.broadcast %23 : vector<8x1xf32> to vector<8x256xf32>
    %26 = vector.broadcast %24 : vector<1x256xf32> to vector<8x256xf32>
    %27 = arith.mulf %25, %26 : vector<8x256xf32>
    %28 = arith.addf %22, %27 : vector<8x256xf32>
    %29 = math.tanh %28 : vector<8x256xf32>
    %c0_5 = arith.constant 0 : index
    %c0_6 = arith.constant 0 : index
    %30 = vector.load %arg3[%c0_5, %c0_6] : memref<256x128xf32, #tpu.memory_space<vmem>>, vector<256x128xf32>
    %cst = arith.constant dense<0.000000e+00> : vector<8x128xf32>
    %31 = tpu.matmul %29, %30, %cst {dimension_numbers = #tpu.dot_dimension_numbers<[1], [0], [0], [1], [0, 0, 1, 1], [], []>} : vector<8x256xf32>, vector<256x128xf32>, vector<8x128xf32> -> vector<8x128xf32>
    %c0_7 = arith.constant 0 : index
    %c0_8 = arith.constant 0 : index
    %32 = vector.load %arg4[%c0_7, %c0_8] : memref<1x128xf32, #tpu.memory_space<vmem>>, vector<1x128xf32>
    %33 = vector.broadcast %32 : vector<1x128xf32> to vector<8x128xf32>
    %34 = arith.addf %31, %33 : vector<8x128xf32>
    %c0_9 = arith.constant 0 : index
    %c0_10 = arith.constant 0 : index
    %35 = vector.load %arg5[%c0_9, %c0_10] : memref<8x128xf32, #tpu.memory_space<vmem>>, vector<8x128xf32>
    tpu.vector_store %arg5[%c0_9, %c0_10], %34 {strides = array<i32>} : memref<8x128xf32, #tpu.memory_space<vmem>>, vector<8x128xf32>,
    return
  }
}

</mosaic_0001>

<bundles_post_ra>
// kernel: tpu_custom_call.1
= control target key start
LH: loop header
LB: loop body
LE: loop exit
PB: predicated region body
PF: predicated region fallthrough
CT: control target
= control target key end

     0   :  { %10 = vsyncpa [#allocation3], 0  ;;  %s325_s0 = inlined_call_operand.vmem [shape: f32[8,4], index: 0, kind: input, shape index: {}]   ;;  %s326_s1 = inlined_call_operand.vmem [shape: f32[4,256], index: 1, kind: input, shape index: {}]   ;;  %s327_s2 = inlined_call_operand.vmem [shape: f32[1,256], index: 2, kind: input, shape index: {}]   ;;  %s328_s3 = inlined_call_operand.hbm [shape: f32[256,128], index: 3, kind: input, shape index: {}]   ;;  %s329_s4 = inlined_call_operand.vmem [shape: f32[1,128], index: 4, kind: input, shape index: {}]   ;;  %s330_s5 = inlined_call_operand.hbm [shape: f32[8,128], index: 5, kind: output, shape index: {}]  }
   0x1   :  { %11 = vsyncpa [#allocation4], 0  ;;  %s22_s20 = sshll.u32 %s328_s3, 4  ;;  %s269_s21 = smov [#allocation2]   ;;  %s23_s20 = int_to_ptr.hbm [resolvable:$true] %s22_s20 }
   0x2   :  { %s24_s22 = sshll.u32 %s269_s21, 4  ;;  %s270_s23 = smov 128   ;;  %s25_s22 = int_to_ptr.vmem [resolvable:$true] %s24_s22 }
   0x3   :  { %s271_s24 = smov 8  }
   0x4   :  { %30 = dma.hbm_to_vmem [thread:$0]  %s23_s20, 4096, %s25_s22, [#allocation3], %s270_s23, %s270_s23, %s271_s24  }
   0x5   :  { %265 = dma.done.wait [#allocation3], 4096  }
   0x6   :  { %266 = vsyncadd [#allocation3], 4294963200  ;;  %v272_v0 = vmov 0   ;;  %v273_v1 = vmov 2   ;;  %v37_v2 = vld [vmem:[%s325_s0] sm:$0xff]  ;;  %v120_v3 = vld [vmem:[#allocation2 + $0x78] sm:$0xff] }
   0x7   :  { %207 = vset.pattern.permute.xlu0 %v272_v0  ;;  %209 = vset.pattern.permute.xlu1 %v273_v1  ;;  %v136_v4 = vld [vmem:[#allocation2 + $0xf8] sm:$0xff]  ;;  %v119_v5 = vld [vmem:[#allocation2 + $0x70] sm:$0xff]  ;;  %v118_v7 = vld [vmem:[#allocation2 + $0x68] sm:$0xff]  ;;  %v274_v11 = vmov 1   ;;  %v275_v12 = vmov 3   ;;  %s276_s29 = smov [#allocation5]  }
   0x8   :  { %47 = vperm.xlu0 %207, %v37_v2   ;;  %76 = vperm.xlu1 %209, %v37_v2   ;;  %v135_v6 = vld [vmem:[#allocation2 + $0xf0] sm:$0xff]  ;;  %v134_v8 = vld [vmem:[#allocation2 + $0xe8] sm:$0xff]  ;;  %v117_v9 = vld [vmem:[#allocation2 + $0x60] sm:$0xff]  ;;  %s187_s30 = sshll.u32 %s276_s29, 4  ;;  %s189_s8 = sshll.u32 %s330_s5, 4  ;;  %s188_s30 = int_to_ptr.vmem [resolvable:$true] %s187_s30  ;;  %s190_s8 = int_to_ptr.hbm [resolvable:$true] %s189_s8 }
   0x9   :  { %141 = vmatpush.msra.mxu0 %v120_v3  ;;  %161 = vmatpush.msra.mxu1 %v136_v4  ;;  %v133_v10 = vld [vmem:[#allocation2 + $0xe0] sm:$0xff]  ;;  %v116_v13 = vld [vmem:[#allocation2 + $0x58] sm:$0xff]  ;;  %v115_v15 = vld [vmem:[#allocation2 + $0x50] sm:$0xff] }
   0xa   :  { %v132_v14 = vld [vmem:[#allocation2 + $0xd8] sm:$0xff]  ;;  %v131_v16 = vld [vmem:[#allocation2 + $0xd0] sm:$0xff]  ;;  %v114_v17 = vld [vmem:[#allocation2 + $0x48] sm:$0xff] }
   0xb   :  { %142 = vmatpush.msra.mxu0 %v119_v5  ;;  %162 = vmatpush.msra.mxu1 %v135_v6  ;;  %v130_v18 = vld [vmem:[#allocation2 + $0xc8] sm:$0xff]  ;;  %v113_v19 = vld [vmem:[#allocation2 + $0x40] sm:$0xff]  ;;  %v112_v21 = vld [vmem:[#allocation2 + $0x38] sm:$0xff] }
   0xc   :  { %v129_v20 = vld [vmem:[#allocation2 + $0xc0] sm:$0xff]  ;;  %v128_v22 = vld [vmem:[#allocation2 + $0xb8] sm:$0xff]  ;;  %v111_v23 = vld [vmem:[#allocation2 + $0x30] sm:$0xff] }
   0xd   :  { %143 = vmatpush.msra.mxu0 %v118_v7  ;;  %163 = vmatpush.msra.mxu1 %v134_v8  ;;  %v127_v24 = vld [vmem:[#allocation2 + $0xb0] sm:$0xff]  ;;  %v110_v25 = vld [vmem:[#allocation2 + $0x28] sm:$0xff]  ;;  %v109_v27 = vld [vmem:[#allocation2 + $0x20] sm:$0xff] }
   0xe   :  { %v126_v26 = vld [vmem:[#allocation2 + $0xa8] sm:$0xff]  ;;  %v125_v28 = vld [vmem:[#allocation2 + $0xa0] sm:$0xff]  ;;  %v108_v29 = vld [vmem:[#allocation2 + $0x18] sm:$0xff] }
   0xf   :  { %144 = vmatpush.msra.mxu0 %v117_v9  ;;  %164 = vmatpush.msra.mxu1 %v133_v10  ;;  %v124_v30 = vld [vmem:[#allocation2 + $0x98] sm:$0xff]  ;;  %v107_v31 = vld [vmem:[#allocation2 + $0x10] sm:$0xff]  ;;  %v106_v33 = vld [vmem:[#allocation2 + $0x8] sm:$0xff] }
  0x10   :  { %208 = vset.pattern.permute.xlu0 %v274_v11  ;;  %210 = vset.pattern.permute.xlu1 %v275_v12  ;;  %v123_v32 = vld [vmem:[#allocation2 + $0x90] sm:$0xff]  ;;  %v122_v34 = vld [vmem:[#allocation2 + $0x88] sm:$0xff]  ;;  %v105_v35 = vld [vmem:[#allocation2] sm:$0xff] }
  0x11   :  { %62 = vperm.xlu0 %208, %v37_v2   ;;  %90 = vperm.xlu1 %210, %v37_v2   ;;  %v121_v36 = vld [vmem:[#allocation2 + $0x80] sm:$0xff] }
  0x12   :  { %145 = vmatpush.msra.mxu0 %v116_v13  ;;  %165 = vmatpush.msra.mxu1 %v132_v14  ;;  %v38_v37 = vld [vmem:[%s326_s1] sm:$0xff] }
  0x13   :  { %v51_v38 = vperm.slane %v38_v37, 0  ;;  %v52_v39 = vperm.slane %v38_v37, 4  ;;  %v39_v42 = vld [vmem:[%s327_s2] sm:$0x3]  ;;  %v65_v45 = vperm.slane %v38_v37, 1  ;;  %v66_v46 = vperm.slane %v38_v37, 5 }
  0x14   :  { %146 = vmatpush.msra.mxu0 %v115_v15  ;;  %166 = vmatpush.msra.mxu1 %v131_v16  ;;  %v79_v47 = vperm.slane %v38_v37, 2  ;;  %v80_v48 = vperm.slane %v38_v37, 6  ;;  %v93_v49 = vperm.slane %v38_v37, 3  ;;  %v94_v50 = vperm.slane %v38_v37, 7  ;;  %v212_v15 = vld [vmem:[%s329_s4] ss:$0 sm:$0xff] }
  0x15   :  { %v55_v43 = vperm.slane %v51_v38, 0  ;;  %v56_v44 = vperm.slane %v52_v39, 0  ;;  %v41_v51 = vperm.slane %v39_v42, 0  ;;  %v42_v52 = vperm.slane %v39_v42, 1 }
  0x16   :  { %147 = vmatpush.msra.mxu0 %v114_v17  ;;  %167 = vmatpush.msra.mxu1 %v130_v18  ;;  %v69_v55 = vperm.slane %v65_v45, 1  ;;  %v70_v56 = vperm.slane %v66_v46, 1  ;;  %v83_v57 = vperm.slane %v79_v47, 2  ;;  %v84_v58 = vperm.slane %v80_v48, 2 }
  0x17   :  { %v97_v59 = vperm.slane %v93_v49, 3  ;;  %v98_v60 = vperm.slane %v94_v50, 3 }
  0x18   :  { %148 = vmatpush.msra.mxu0 %v113_v19  ;;  %168 = vmatpush.msra.mxu1 %v129_v20 }
  0x19   :  { %211 = vset.pattern.permute.xlu0 %v275_v12 }
  0x1a   :  { %149 = vmatpush.msra.mxu0 %v112_v21  ;;  %169 = vmatpush.msra.mxu1 %v128_v22 }
  0x1c   :  { %150 = vmatpush.msra.mxu0 %v111_v23  ;;  %170 = vmatpush.msra.mxu1 %v127_v24 }
  0x1e   :  { %151 = vmatpush.msra.mxu0 %v110_v25  ;;  %171 = vmatpush.msra.mxu1 %v126_v26 }
  0x20   :  { %152 = vmatpush.msra.mxu0 %v109_v27  ;;  %172 = vmatpush.msra.mxu1 %v125_v28 }
  0x22   :  { %153 = vmatpush.msra.mxu0 %v108_v29  ;;  %173 = vmatpush.msra.mxu1 %v124_v30 }
  0x24   :  { %154 = vmatpush.msra.mxu0 %v107_v31  ;;  %174 = vmatpush.msra.mxu1 %v123_v32 }
  0x26   :  { %155 = vmatpush.msra.mxu0 %v106_v33  ;;  %175 = vmatpush.msra.mxu1 %v122_v34 }
  0x28   :  { %156 = vmatpush.msra.mxu0 %v105_v35  ;;  %176 = vmatpush.msra.mxu1 %v121_v36 }
  0x7a   :  { %v48_v40 = vpop.permute.xlu0 %47  ;;  %v77_v41 = vpop.permute.xlu1 %76 }
  0x7b   :  { %v57_v53 = vmul.f32 %v55_v43, %v48_v40  ;;  %v58_v54 = vmul.f32 %v56_v44, %v48_v40  ;;  %v85_v3 = vmul.f32 %v83_v57, %v77_v41  ;;  %v86_v4 = vmul.f32 %v84_v58, %v77_v41 }
  0x7d   :  { %v59_v63 = vadd.f32 %v57_v53, %v41_v51  ;;  %v60_v0 = vadd.f32 %v58_v54, %v42_v52 }
  0x83   :  { %v63_v61 = vpop.permute.xlu0 %62  ;;  %v91_v62 = vpop.permute.xlu1 %90 }
  0x84   :  { %v71_v1 = vmul.f32 %v69_v55, %v63_v61  ;;  %v72_v2 = vmul.f32 %v70_v56, %v63_v61  ;;  %v99_v7 = vmul.f32 %v97_v59, %v91_v62  ;;  %v100_v8 = vmul.f32 %v98_v60, %v91_v62 }
  0x86   :  { %v73_v5 = vadd.f32 %v71_v1, %v59_v63  ;;  %v74_v6 = vadd.f32 %v72_v2, %v60_v0 }
  0x88   :  { %v87_v9 = vadd.f32 %v85_v3, %v73_v5  ;;  %v88_v10 = vadd.f32 %v86_v4, %v74_v6 }
  0x8a   :  { %v101_v11 = vadd.f32 %v99_v7, %v87_v9  ;;  %v102_v12 = vadd.f32 %v100_v8, %v88_v10 }
  0x8c   :  { %213 = vtanh.f32 %v101_v11 }
  0x8d   :  { %215 = vtanh.f32 %v102_v12 }
  0x92   :  { %v214_v13 = vpop.eup %213 }
  0x93   :  { %v216_v14 = vpop.eup %215  ;;  %157 = vmatmul.f32.vlgmr.msra.gmra.mxu0 %v214_v13 }
  0x94   :  { %177 = vmatmul.f32.vlgmr.msra.gmra.mxu1 %v216_v14 }
 0x110   :  { %v158_v16 = vpop.f32.mrf.mxu0 }
 0x111   :  { %v159_v17 = vadd.f32 %v212_v15, %v158_v16  ;;  %v178_v18 = vpop.f32.mrf.mxu1 }
 0x113   :  { %v179_v19 = vadd.f32 %v178_v18, %v159_v17 }
 0x115   :  { %181 = vst [vmem:[#allocation5] sm:$0xff] %v179_v19 }
 0x116   :  { %192 = dma.vmem_to_hbm [thread:$0]  %s188_s30, 128, %s190_s8, [#allocation4]  }
 0x117   :  { %267 = dma.done.wait [#allocation4], 128  }
 0x118   :  { %268 = vsyncadd [#allocation4], 4294967168 }
 0x119   :  { %197 = vsyncpa [#allocation3], 1 }
 0x11a   :  { %198 = vsyncpa [#allocation4], 1 }

</bundles_post_ra>
